<compile_context>
chip_gen: v5e
topology: v5e:2x2
jax: 0.10.0
libtpu: 0.0.40
codegen_flags: <defaults>
</compile_context>

<pallas_src>
import math
import functools

import jax
import jax.numpy as jnp
from jax.experimental import pallas as pl
from jax.experimental.pallas import tpu as pltpu


_DEFAULT_MAX_BLOCK_BYTES = 4 * 1024 * 1024  # per-block VMEM budget (f32 elements)


def _choose_lane_width(n):
    """Largest lane width in {512, 256, 128} dividing n that keeps >= 8 sublane rows."""
    for lane in (512, 256, 128):
        if n % lane == 0 and n // lane >= 8:
            return lane
    if n % 128 == 0:
        return 128
    return n  # ragged fallback: one full-width chunk (block dims == full dims)


def _choose_row_block(r, lane, max_block_elems):
    """Largest TR with TR | R and (TR % 8 == 0 or TR == R) within the block budget."""
    cap = max(1, max_block_elems // lane)
    if r <= cap:
        return r
    start = cap - cap % 8
    for tr in range(start, 0, -8):
        if r % tr == 0:
            return tr
    return r  # pathological factorization: fall back to the whole row


def _l2proj_kernel(numx, alpha_ref, stdn_ref, x_ref, o_ref, acc_ref):
    """alpha_ref: (1,) f32 SMEM, stdn_ref: (B,) f32 SMEM,
    x_ref / o_ref: (1, TR, L) f32 VMEM blocks, acc_ref: (1, 1) f32 VMEM scratch."""
    b = pl.program_id(0)
    phase = pl.program_id(1)
    k = pl.program_id(2)

    @pl.when((phase == 0) & (k == 0))
    def _():
        acc_ref[...] = jnp.zeros_like(acc_ref)

    @pl.when(phase == 0)
    def _():
        x = x_ref[...]                               # (1, TR, L)
        xsq = x * x
        col = jnp.sum(xsq, axis=1, keepdims=True)    # sublane reduce: mostly VPU adds
        part = jnp.sum(col, axis=2, keepdims=True)   # single cross-lane (XLU) reduce
        acc_ref[...] += part[0]                      # (1, 1) accumulator

    @pl.when(phase == 1)
    def _():
        # eps_b = exp(alpha) * stdn_b * sqrt(N - 1)   (cheap scalar path, SMEM reads)
        eps = jnp.exp(alpha_ref[0]) * stdn_ref[b] * numx
        norm = jnp.sqrt(acc_ref[...])                # (1, 1) full-row L2 norm
        # NOTE: matches torch semantics -- stdn==0 with an all-zero row gives 0/0.
        scale = eps * pl.reciprocal(jnp.maximum(norm, eps), approx=False)
        o_ref[...] = x_ref[...] * scale              # broadcast over (1, TR, L)


def l2proj(x, stdn, alpha, *, max_block_bytes=_DEFAULT_MAX_BLOCK_BYTES):
    """x: (B, C, H, W) f32, stdn: (B,) f32, alpha: scalar f32 -> (B, C, H, W) f32."""
    B, C, H, W = x.shape
    N = C * H * W
    numx = math.sqrt(float(N) - 1.0)                 # matches torch: sqrt(C*H*W - 1)

    lane = _choose_lane_width(N)
    R = N // lane
    TR = _choose_row_block(R, lane, max_block_bytes // 4)
    K = R // TR

    x_view = x.reshape(B, R, lane).astype(jnp.float32)
    stdn_arr = jnp.asarray(stdn, jnp.float32).reshape(B)
    alpha_arr = jnp.asarray(alpha, jnp.float32).reshape(1)

    out = pl.pallas_call(
        functools.partial(_l2proj_kernel, numx),
        out_shape=jax.ShapeDtypeStruct((B, R, lane), jnp.float32),
        grid=(B, 2, K),
        in_specs=[
            pl.BlockSpec(memory_space=pltpu.MemorySpace.SMEM),       # alpha (1,)
            pl.BlockSpec(memory_space=pltpu.MemorySpace.SMEM),       # stdn (B,)
            pl.BlockSpec((1, TR, lane), lambda b, p, k: (b, k, 0)),  # x chunks
        ],
        # Phase 0 parks the (unwritten) output window on chunk 0; phase 1 walks the
        # chunks and writes them, so every output block is flushed exactly once.
        out_specs=pl.BlockSpec((1, TR, lane), lambda b, p, k: (b, p * k, 0)),
        scratch_shapes=[pltpu.VMEM((1, 1), jnp.float32)],
        compiler_params=pltpu.CompilerParams(
            dimension_semantics=("parallel", "arbitrary", "arbitrary"),
            vmem_limit_bytes=32 * 1024 * 1024,
        ),
    )(alpha_arr, stdn_arr, x_view)

    return out.reshape(B, C, H, W)


def _l2proj_ref(x, stdn, alpha):
    """Pure-JAX reference mirroring the PyTorch forward."""
    B, C, H, W = x.shape
    numx = jnp.sqrt(jnp.float32(C * H * W) - 1.0)
    eps = (jnp.exp(alpha) * stdn * numx).reshape(B, 1, 1, 1)
    x_norm = jnp.linalg.norm(x.reshape(B, -1), axis=1).reshape(B, 1, 1, 1)
    return x * (eps / jnp.maximum(x_norm, eps))


if __name__ == "__main__":
    key = jax.random.PRNGKey(0)
    kx, ks, kx2, ks2 = jax.random.split(key, 4)
    alpha = jnp.float32(-0.5)

    # Case 1: small demo shape -> whole row in one chunk (K == 1, single HBM read).
    B, C, H, W = 2, 4, 16, 16
    x = jax.random.normal(kx, (B, C, H, W), dtype=jnp.float32)
    stdn = jax.random.uniform(ks, (B,), dtype=jnp.float32, minval=0.01, maxval=0.1)

    out = jax.block_until_ready(l2proj(x, stdn, alpha))
    ref = _l2proj_ref(x, stdn, alpha)
    assert out.shape == (B, C, H, W)
    assert jnp.allclose(out, ref, atol=1e-5, rtol=1e-5), "case 1 mismatch vs reference"

    # Case 2: force the multi-chunk (K > 1) two-phase path with a tiny block budget.
    B2, C2, H2, W2 = 2, 8, 32, 32                    # N = 8192 -> (R, L) = (16, 512)
    x2 = jax.random.normal(kx2, (B2, C2, H2, W2), dtype=jnp.float32)
    stdn2 = jax.random.uniform(ks2, (B2,), dtype=jnp.float32, minval=0.01, maxval=0.1)

    out2 = jax.block_until_ready(
        l2proj(x2, stdn2, alpha, max_block_bytes=4096 * 4))  # TR = 8, K = 2
    ref2 = _l2proj_ref(x2, stdn2, alpha)
    assert jnp.allclose(out2, ref2, atol=1e-5, rtol=1e-5), "case 2 mismatch vs reference"

    print("KERNEL_OK")
</pallas_src>

<mosaic_0001>
module attributes {stable_mosaic.version = 11 : i64} {
  func.func @_l2proj_kernel(%arg0: i32, %arg1: i32, %arg2: i32, %arg3: memref<1xf32, #tpu.memory_space<smem>>, %arg4: memref<2xf32, #tpu.memory_space<smem>>, %arg5: memref<1x8x128xf32, #tpu.memory_space<vmem>>, %arg6: memref<1x8x128xf32, #tpu.memory_space<vmem>>, %arg7: memref<1x1xf32, #tpu.memory_space<vmem>>) attributes {dimension_semantics = [#tpu.dimension_semantics<parallel>, #tpu.dimension_semantics<arbitrary>, #tpu.dimension_semantics<arbitrary>], iteration_bounds = array<i64: 2, 2, 1>, scalar_prefetch = 0 : i64, scratch_operands = 1 : i64, tpu.core_type = #tpu.core_type<tc>, window_params = [{transform_indices = @transform_0, window_bounds = array<i64: 1>}, {transform_indices = @transform_1, window_bounds = array<i64: 2>}, {transform_indices = @transform_2, window_bounds = array<i64: 1, 8, 128>}, {transform_indices = @transform_3, window_bounds = array<i64: 1, 8, 128>}]} {
    %c0_i32 = arith.constant 0 : i32
    %0 = arith.cmpi eq, %arg1, %c0_i32 : i32
    %c0_i32_0 = arith.constant 0 : i32
    %1 = arith.cmpi eq, %arg2, %c0_i32_0 : i32
    %2 = arith.andi %0, %1 : i1
    %3 = arith.extui %2 : i1 to i32
    %c0_i32_1 = arith.constant 0 : i32
    %4 = arith.cmpi ne, %3, %c0_i32_1 : i32
    scf.if %4 {
      %cst = arith.constant 0.000000e+00 : f32
      %11 = vector.broadcast %cst : f32 to vector<1x1xf32>
      %c0 = arith.constant 0 : index
      %c0_5 = arith.constant 0 : index
      %12 = vector.load %arg7[%c0, %c0_5] : memref<1x1xf32, #tpu.memory_space<vmem>>, vector<1x1xf32>
      tpu.vector_store %arg7[%c0, %c0_5], %11 {strides = array<i32>} : memref<1x1xf32, #tpu.memory_space<vmem>>, vector<1x1xf32>,
    } else {
    }
    %c0_i32_2 = arith.constant 0 : i32
    %5 = arith.cmpi eq, %arg1, %c0_i32_2 : i32
    %6 = arith.extui %5 : i1 to i32
    %c0_i32_3 = arith.constant 0 : i32
    %7 = arith.cmpi ne, %6, %c0_i32_3 : i32
    scf.if %7 {
      %c0 = arith.constant 0 : index
      %c0_5 = arith.constant 0 : index
      %c0_6 = arith.constant 0 : index
      %11 = vector.load %arg5[%c0, %c0_5, %c0_6] : memref<1x8x128xf32, #tpu.memory_space<vmem>>, vector<1x8x128xf32>
      %12 = arith.mulf %11, %11 : vector<1x8x128xf32>
      %cst = arith.constant dense<0.000000e+00> : vector<1x128xf32>
      %13 = vector.multi_reduction <add>, %12, %cst [1] : vector<1x8x128xf32> to vector<1x128xf32>
      %14 = vector.shape_cast %13 : vector<1x128xf32> to vector<1x1x128xf32>
      %cst_7 = arith.constant dense<0.000000e+00> : vector<1x1xf32>
      %15 = vector.multi_reduction <add>, %14, %cst_7 [2] : vector<1x1x128xf32> to vector<1x1xf32>
      %16 = vector.shape_cast %15 : vector<1x1xf32> to vector<1x1x1xf32>
      %c0_8 = arith.constant 0 : index
      %c0_9 = arith.constant 0 : index
      %17 = vector.load %arg7[%c0_8, %c0_9] : memref<1x1xf32, #tpu.memory_space<vmem>>, vector<1x1xf32>
      %18 = vector.shape_cast %16 : vector<1x1x1xf32> to vector<1x1xf32>
      %19 = arith.addf %17, %18 : vector<1x1xf32>
      %c0_10 = arith.constant 0 : index
      %c0_11 = arith.constant 0 : index
      %20 = vector.load %arg7[%c0_10, %c0_11] : memref<1x1xf32, #tpu.memory_space<vmem>>, vector<1x1xf32>
      tpu.vector_store %arg7[%c0_10, %c0_11], %19 {strides = array<i32>} : memref<1x1xf32, #tpu.memory_space<vmem>>, vector<1x1xf32>,
    } else {
    }
    %c1_i32 = arith.constant 1 : i32
    %8 = arith.cmpi eq, %arg1, %c1_i32 : i32
    %9 = arith.extui %8 : i1 to i32
    %c0_i32_4 = arith.constant 0 : i32
    %10 = arith.cmpi ne, %9, %c0_i32_4 : i32
    scf.if %10 {
      %c0 = arith.constant 0 : index
      %11 = memref.load %arg3[%c0] : memref<1xf32, #tpu.memory_space<smem>>
      %12 = math.exp %11 : f32
      %13 = arith.index_cast %arg0 : i32 to index
      %14 = memref.load %arg4[%13] : memref<2xf32, #tpu.memory_space<smem>>
      %15 = arith.mulf %12, %14 : f32
      %cst = arith.constant 31.9843712 : f32
      %16 = arith.mulf %15, %cst : f32
      %c0_5 = arith.constant 0 : index
      %c0_6 = arith.constant 0 : index
      %17 = vector.load %arg7[%c0_5, %c0_6] : memref<1x1xf32, #tpu.memory_space<vmem>>, vector<1x1xf32>
      %18 = math.sqrt %17 : vector<1x1xf32>
      %19 = vector.broadcast %16 : f32 to vector<1x1xf32>
      %20 = arith.maximumf %18, %19 : vector<1x1xf32>
      %21 = tpu.reciprocal %20 : vector<1x1xf32> -> vector<1x1xf32>
      %22 = vector.broadcast %16 : f32 to vector<1x1xf32>
      %23 = arith.mulf %22, %21 : vector<1x1xf32>
      %c0_7 = arith.constant 0 : index
      %c0_8 = arith.constant 0 : index
      %c0_9 = arith.constant 0 : index
      %24 = vector.load %arg5[%c0_7, %c0_8, %c0_9] : memref<1x8x128xf32, #tpu.memory_space<vmem>>, vector<1x8x128xf32>
      %25 = vector.shape_cast %23 : vector<1x1xf32> to vector<1x1x1xf32>
      %26 = vector.broadcast %25 : vector<1x1x1xf32> to vector<1x8x128xf32>
      %27 = arith.mulf %24, %26 : vector<1x8x128xf32>
      %c0_10 = arith.constant 0 : index
      %c0_11 = arith.constant 0 : index
      %c0_12 = arith.constant 0 : index
      %28 = vector.load %arg6[%c0_10, %c0_11, %c0_12] : memref<1x8x128xf32, #tpu.memory_space<vmem>>, vector<1x8x128xf32>
      tpu.vector_store %arg6[%c0_10, %c0_11, %c0_12], %27 {strides = array<i32>} : memref<1x8x128xf32, #tpu.memory_space<vmem>>, vector<1x8x128xf32>,
    } else {
    }
    return
  }
  func.func @transform_0(%arg0: i32, %arg1: i32, %arg2: i32) -> i32 {
    %c0_i32 = arith.constant 0 : i32
    %c0_i32_0 = arith.constant 0 : i32
    return %c0_i32 : i32
  }
  func.func @transform_1(%arg0: i32, %arg1: i32, %arg2: i32) -> i32 {
    %c0_i32 = arith.constant 0 : i32
    %c0_i32_0 = arith.constant 0 : i32
    return %c0_i32 : i32
  }
  func.func @transform_2(%arg0: i32, %arg1: i32, %arg2: i32) -> (i32, i32, i32) {
    %c0_i32 = arith.constant 0 : i32
    %c0_i32_0 = arith.constant 0 : i32
    return %arg0, %arg2, %c0_i32 : i32, i32, i32
  }
  func.func @transform_3(%arg0: i32, %arg1: i32, %arg2: i32) -> (i32, i32, i32) {
    %0 = arith.muli %arg1, %arg2 : i32
    %c0_i32 = arith.constant 0 : i32
    %c0_i32_0 = arith.constant 0 : i32
    return %arg0, %0, %c0_i32 : i32, i32, i32
  }
}

</mosaic_0001>

<bundles_post_ra>
// kernel: tpu_custom_call.1
= control target key start
LH: loop header
LB: loop body
LE: loop exit
PB: predicated region body
PF: predicated region fallthrough
CT: control target
= control target key end

     0   :  { %s897_s0 = inlined_call_operand.<no memory space> [shape: f32[1], index: 0, kind: input, shape index: {}]   ;;  %s898_s1 = inlined_call_operand.vmem [shape: f32[2], index: 1, kind: input, shape index: {}]   ;;  %s899_s2 = inlined_call_operand.hbm [shape: f32[2,8,128], index: 2, kind: input, shape index: {}]   ;;  %s900_s3 = inlined_call_operand.hbm [shape: f32[2,8,128], index: 3, kind: output, shape index: {}]  }
   0x1   :  { %901 = sst [smem:[#allocation13_spill]] %s898_s1 }
   0x2   :  { %8 = sst [smem:[#allocation3]] %s897_s0 }
   0x3   :  { %9 = vsyncpa [#allocation7], 0 }
   0x4   :  { %10 = vsyncpa [#allocation5], 0 }
   0x5   :  { %12 = vsyncpa [#allocation5 + $0x1], 0 }
   0x6   :  { %13 = vsyncpa [#allocation6], 0 }
   0x7   :  { %15 = vsyncpa [#allocation6 + $0x1], 0  ;;  %s716_s14 = smov 0   ;;  %s718_s15 = smov 0  }
   0x8   :  { %s720_s16 = smov 0   ;;  %s722_s17 = smov 0  }
   0x9   :  { %s724_s18 = smov 0   ;;  %s726_s19 = smov 0  }
   0xa   :  { %s728_s20 = smov 0   ;;  %s730_s0 = smov 0  }
   0xb LB: > { %s422_s21 = sadd.s32 4294967295, %s688_s0   ;;  %s423_s22 = sadd.s32 4294967294, %s688_s0   ;;  %s688_s0 = sphi %s730_s0, %s21_s0   ;;  %s684_s20 = sphi %s728_s20, %s916_s20   ;;  %s680_s19 = sphi %s726_s19, %s915_s19   ;;  %s676_s18 = sphi %s724_s18, %s914_s18   ;;  %s672_s17 = sphi %s722_s17, %s913_s17   ;;  %s668_s16 = sphi %s720_s16, %s912_s16   ;;  %s664_s15 = sphi %s718_s15, %s911_s15   ;;  %s660_s14 = sphi %s716_s14, %s910_s14  }
   0xc   : > { %p104_p0 = scmp.ne.s32.totalorder %s664_s15, %s660_s14  ;;  %p760_p1 = scmp.eq.s32.totalorder %s422_s21, 0 }
   0xd   : > { %p764_p2 = scmp.eq.s32.totalorder %s422_s21, 3  ;;  %p138_p3 = scmp.eq.s32.totalorder %s423_s22, 3 }
   0xe   : > { %p770_p4 = por %p760_p1, %p104_p0  ;;  %p424_p5 = scmp.ge.s32.totalorder %s688_s0, 1 }
   0xf   : > { %p775_p6 = por %p138_p3, %p104_p0  ;;  %p145_p7 = scmp.lt.s32.totalorder %s688_s0, 5 }
  0x10   : > { %s906_s1 = sld [smem:[#allocation13_spill]]  ;;  %s36_s4 = sadd.s32 1, %s680_s19 }
  0x11   : > { %p783_p8 = pnand %p424_p5, %p145_p7  ;;  %s690_s5 = smov [#allocation4]  }
  0x12   : > { %p38_p11 = scmp.ge.s32.totalorder %s36_s4, 2  ;;  %s40_s6 = sadd.s32 1, %s684_s20 }
  0x13   : > { %p451_p9 = pneg %p783_p8  ;;  %s91_s7 = sadd.s32 1, %s668_s16 }
  0x14   : > { %p98_p12 = scmp.ne.s32.totalorder %s668_s16, %s664_s15  ;;  %s918_s4 = smov (%p38_p11, %s36_s4), 0 }
  0x15   : > { %p452_p10 = pnand %p451_p9, %p760_p1  ;;  %s920_s6 = smov (!%p38_p11, %s40_s6), %s684_s20 }
  0x16   : > { %s160_s29 = sshll.u32 %s906_s1, 4  ;;  %p99_p13 = scmp.eq.s32.totalorder %s688_s0, 0  ;;  %s161_s29 = int_to_ptr.vmem [resolvable:$true] %s160_s29 }
  0x17   : > { %454 = dma.vmem_to_smem (!%p452_p10), %s161_s29, 16, %s690_s5, [#allocation7]  }
  0x18   : > { %p802_p0 = por %p764_p2, %p98_p12  ;;  %p42_p3 = scmp.ge.s32.totalorder %s920_s6, 2 }
  0x19   : > { %p464_p5 = scmp.lt.s32.totalorder %s688_s0, 4  ;;  %p807_p7 = por %p99_p13, %p98_p12 }
  0x1a   : > { %s171_s10 = sand.u32 1, %s668_s16   ;;  %s922_s6 = smov (%p42_p3, %s920_s6), 0 }
  0x1b   : > { %s427_s11 = sshll.u32 %s171_s10, 3  ;;  %s86_s12 = ssub.s32 %s684_s20, %s922_s6 }
  0x1c   : > { %p89_p9 = scmp.eq.s32.totalorder %s86_s12, 0  ;;  %s428_s13 = sshll.u32 %s684_s20, 3 }
  0x1d   : > { %s180_s24 = scalar_lea.hbm %s899_s2, %s428_s13  ;;  %s175_s27 = scalar_lea.vmem [#allocation8], %s427_s11 }
  0x1e   : > { %s184_s28 = sshll.u32 %s175_s27, 4  ;;  %s182_s5 = sshll.u32 %s180_s24, 4  ;;  %s185_s28 = int_to_ptr.vmem [resolvable:$true] %s184_s28  ;;  %s183_s5 = int_to_ptr.hbm [resolvable:$true] %s182_s5 }
  0x1f   : > { %s821_s29 = scalar_select %p89_p9, %s668_s16, %s91_s7  }
  0x20   : > { %p456_p2 = pnand %p464_p5, %p807_p7  ;;  %s172_s1 = scalar_lea.sflag [#allocation5], %s171_s10 }
  0x21   : > { %193 = sbr.rel (%p783_p8) target bundleno = 421 (0x1a5), region = 32 }
  0x22   : > { %458 = dma.hbm_to_vmem [thread:$0]  (!%p456_p2), %s183_s5, 128, %s185_s28, %s172_s1  }
  0x26   : > { %647 = dma.done.wait (%p760_p1), [#allocation7], 16  }
  0x27   : > { %649 = vsyncadd (%p760_p1), [#allocation7], 4294967280  ;;  %s834_s7 = sand.u32 1, %s664_s15  }
  0x28   : > { %s431_s9 = sshll.u32 %s834_s7, 3  ;;  %s201_s11 = scalar_lea.sflag [#allocation5], %s834_s7 }
  0x29   : > { %s838_s12 = scalar_lea.vmem [#allocation8], %s431_s9 }
  0x2a   : > { %651 = dma.done.wait (%p770_p4), %s201_s11, 128  }
  0x2b   : > { %653 = vsyncadd (%p770_p4), %s201_s11, 4294967168 }
  0x2c   : > { %210 = sfence }
  0x2d   : > { %p230_p8 = scmp.eq.s32.totalorder %s672_s17, 0  ;;  %s845_s1 = scalar_lea.vmem [#allocation9], %s431_s9 }
  0x2e   : > { %vm236_vm0 = vcmask (%p230_p8), 0   ;;  %v691_v0 = vmov (%p230_p8), 0.0  }
  0x2f   : > { %235 = sbr.rel (!%p230_p8) target bundleno = 52 (0x34), region = 44  ;;  %237 = vst.msk [vmem:[#allocation2] sm:$0x1] (%p230_p8), %vm236_vm0, %v691_v0 }
  0x34 PF: > { %p434_p1 = scmp.ne.s32.totalorder %s672_s17, 0 }
  0x36   : > { %240 = sbr.rel (%p434_p1) target bundleno = 193 (0xc1), region = 48 }
  0x3b   : > { %v241_v1 = vld [vmem:[%s838_s12] sm:$0xff]  ;;  %v251_v9 = vld [vmem:[#allocation2] sm:$0x1]  ;;  %vm253_vm1 = vcmask 0  }
  0x3c   : > { %v242_v2 = vmul.f32 %v241_v1, %v241_v1 }
  0x3e   : > { %v243_v3 = vrot.slane %v242_v2, 4 }
  0x40   : > { %v244_v4 = vadd.f32 %v243_v3, %v242_v2 }
  0x42   : > { %v245_v5 = vrot.slane %v244_v4, 2 }
  0x44   : > { %v246_v6 = vadd.f32 %v245_v5, %v244_v4 }
  0x46   : > { %v247_v7 = vrot.slane %v246_v6, 1 }
  0x48   : > { %v248_v8 = vadd.f32 %v247_v7, %v246_v6 }
  0x4a   : > { %249 = vadd.xlane.f32.xlu0 %v248_v8 }
  0xbd   : > { %v250_v10 = vpop.xlane.xlu0 %249 }
  0xbe   : > { %v252_v11 = vadd.f32 %v251_v9, %v250_v10 }
  0xc0   : > { %254 = vst.msk [vmem:[#allocation2] sm:$0x1] %vm253_vm1, %v252_v11 }
  0xc1 PF: > { %p435_p4 = scmp.ne.s32.totalorder %s672_s17, 1 }
  0xc2   : > { %s259_s23 = sld [smem:[#allocation3]] (!%p435_p4) }
  0xc3   : > { %258 = sbr.rel (%p435_p4) target bundleno = 406 (0x196), region = 52  ;;  %s264_s25 = sld [smem:[#allocation4 + %s676_s18]] (!%p435_p4) }
  0xc8   : > { %v260_v12 = vstv %s259_s23  ;;  %v267_v15 = vld [vmem:[#allocation2] sm:$0x1]  ;;  %v692_v18 = vmov 0   ;;  %v297_v41 = vld [vmem:[%s838_s12] sm:$0xff] }
  0xc9   : > { %v261_v13 = vmul.f32 1.442695, %v260_v12  ;;  %534 = vset.pattern.permute.xlu0 %v692_v18  ;;  %vm275_vm2 = vcmp.eq.f32.partialorder %v267_v15, inf  ;;  %v278_v24 = vand.u32 2147483648, %v267_v15  ;;  %vm277_vm3 = vcmp.eq.f32.partialorder %v267_v15, 0.0 }
  0xcb   : > { %535 = vpow2.f32 %v261_v13 }
  0xcc   : > { %537 = vrsqrt.f32 %v267_v15 }
  0xd1   : > { %v536_v14 = vpop.eup %535 }
  0xd2   : > { %441 = vpush %v536_v14  ;;  %v538_v16 = vpop.eup %537 }
  0xd3   : > { %v269_v17 = vmul.f32 %v538_v16, %v267_v15 }
  0xd5   : > { %v270_v19 = vmul.f32 %v538_v16, %v269_v17 }
  0xd7   : > { %v271_v20 = vmul.f32 0.5, %v270_v19 }
  0xd9   : > { %v272_v21 = vsub.f32 1.5, %v271_v20 }
  0xdb   : > { %v273_v22 = vmul.f32 %v538_v16, %v272_v21 }
  0xdd   : > { %v274_v23 = vmul.f32 %v273_v22, %v267_v15 }
  0xdf   : > { %v276_v25 = vsel %vm275_vm2, %v267_v15, %v274_v23 }
  0xe0   : > { %v279_v26 = vsel %vm277_vm3, %v278_v24, %v276_v25 }
 0x103   : > { %s442_s17 = spop %441 }
 0x104   : > { %s265_s30 = smul.f32 %s442_s17, %s264_s25 }
 0x106   : > { %s266_s10 = smul.f32 31.984371, %s265_s30 }
 0x108   : > { %v280_v27 = vstv %s266_s10 }
 0x109   : > { %v281_v28 = vmax.f32 %v279_v26, %v280_v27 }
 0x10b   : > { %539 = vrcp.f32 %v281_v28  ;;  %v293_v32 = vand.u32 2147483648, %v281_v28  ;;  %v291_v34 = vand.u32 2147483647, %v281_v28  ;;  %vm287_vm5 = vweird.f32 %v281_v28 }
 0x10d   : > { %v294_v36 = vor.u32 1.1754944e-38, %v293_v32  ;;  %vm292_vm7 = vcmp.eq.f32.partialorder %v291_v34, 8.507059e+37 }
 0x111   : > { %v540_v29 = vpop.eup %539 }
 0x112   : > { %v283_v30 = vmul.f32 %v540_v29, %v281_v28  ;;  %vm288_vm4 = vweird.f32 %v540_v29 }
 0x113   : > { %vm289_vm6 = vmor %vm287_vm5, %vm288_vm4 }
 0x114   : > { %v284_v31 = vsub.f32 1.0, %v283_v30 }
 0x116   : > { %v285_v33 = vmul.f32 %v540_v29, %v284_v31 }
 0x118   : > { %v286_v35 = vadd.f32 %v540_v29, %v285_v33 }
 0x11a   : > { %v290_v37 = vsel %vm289_vm6, %v540_v29, %v286_v35 }
 0x11b   : > { %v295_v38 = vsel %vm292_vm7, %v294_v36, %v290_v37 }
 0x11c   : > { %v296_v39 = vmul.f32 %v295_v38, %v280_v27 }
 0x11e   : > { %v299_v40 = vperm.slane %v296_v39, 0 }
 0x120   : > { %301 = vperm.xlu0 %534, %v299_v40  }
 0x192   : > { %v302_v42 = vpop.permute.xlu0 %301 }
 0x193   : > { %v304_v43 = vmul.f32 %v302_v42, %v297_v41 }
 0x195   : > { %305 = vst [vmem:[%s845_s1] sm:$0xff] %v304_v43 }
 0x196 PF: > { %s437_s13 = sshll.u32 %s676_s18, 3  ;;  %s321_s27 = sshll.u32 %s845_s1, 4  ;;  %s322_s27 = int_to_ptr.vmem [resolvable:$true] %s321_s27 }
 0x197   : > { %s319_s24 = scalar_lea.hbm %s900_s3, %s437_s13  ;;  %s307_s5 = scalar_lea.sflag [#allocation6], %s834_s7 }
 0x198   : > { %s323_s28 = sshll.u32 %s319_s24, 4  ;;  %s606_s18 = scalar_lea.hbm %s900_s3, 16  ;;  %s324_s28 = int_to_ptr.hbm [resolvable:$true] %s323_s28 }
 0x199   : > { %s600_s9 = sshra.s32 %s324_s28, 4  ;;  %s601_s9 = int_to_ptr.hbm [resolvable:$true] %s600_s9 }
 0x19a   : > { %s602_s11 = scalar_lea.hbm %s601_s9, 8  ;;  %p607_p13 = scmp.lt.s32.totalorder %s601_s9, %s900_s3 }
 0x19b   : > { %p603_p10 = scmp.ne.s32.totalorder %s601_s9, %s602_s11  ;;  %p608_p3 = scmp.lt.s32.totalorder %s606_s18, %s602_s11 }
 0x19d   : > { %p604_p11 = pnand %p603_p10, %p802_p0  ;;  %p609_p5 = por %p608_p3, %p607_p13 }
 0x19f   : > { %p605_p12 = pneg %p604_p11 }
 0x1a1   : > { %p610_p7 = pnand %p609_p5, %p605_p12 }
 0x1a3   : > { %613 = shalt.err (!%p610_p7)
}
 0x1a4   : > { %449 = dma.vmem_to_hbm [thread:$0]  (%p802_p0), %s322_s27, 128, %s324_s28, %s307_s5  }
 0x1a5 PF: > { %p466_p9 = scmp.ge.s32.totalorder %s688_s0, 2  ;;  %s335_s7 = sand.u32 1, %s660_s14  }
 0x1a6   : > { %s336_s1 = scalar_lea.sflag [#allocation6], %s335_s7 }
 0x1a7   : > { %p460_p2 = pnand %p466_p9, %p775_p6 }
 0x1a9   : > { %p461_p8 = pneg %p460_p2 }
 0x1ab   : > { %655 = dma.done.wait (%p461_p8), %s336_s1, 128  }
 0x1ac   : > { %657 = vsyncadd (%p461_p8), %s336_s1, 4294967168  ;;  %s21_s0 = sadd.s32 1, %s688_s0   ;;  %s910_s14 = smov %s664_s15 }
 0x1ad   : > { %p18_p1 = scmp.ge.s32.totalorder %s21_s0, 6   ;;  %s911_s15 = smov %s668_s16 }
 0x1ae   : > { %s912_s16 = smov %s821_s29  ;;  %s913_s17 = smov %s680_s19 }
 0x1af   : > { %s914_s18 = smov %s684_s20  ;;  %s915_s19 = smov %s918_s4 }
 0x1b0   : > { %s916_s20 = smov %s922_s6  ;;  %20 = sbr.rel (!%p18_p1) target bundleno = 11 (0xb), region = 94 }
 0x1b5   :  { %342 = vsyncpa [#allocation5], 1 }
 0x1b6   :  { %344 = vsyncpa [#allocation5 + $0x1], 1 }
 0x1b7   :  { %345 = vsyncpa [#allocation6], 1 }
 0x1b8   :  { %347 = vsyncpa [#allocation6 + $0x1], 1 }
 0x1b9   :  { %348 = vsyncpa [#allocation7], 1 }
 0x1ba   :  { %350 = vsyncpa [#allocation7 + $0x1], 1 }

</bundles_post_ra>
